<compile_context>
chip_gen: v7x
topology: tpu7x:2x2x1
jax: 0.10.0
libtpu: 0.0.40
codegen_flags: <defaults>
</compile_context>

<pallas_src>
import functools

import jax
import jax.numpy as jnp
from jax import lax
from jax.experimental import pallas as pl
from jax.experimental.pallas import tpu as pltpu


_MIB = 1024 * 1024
_ROW_GRANULE = 16      # sublane granule safe for both f32 (8) and bf16 (16)
_LANE_GRANULE = 128


def _cdiv(a, b):
    return -(-a // b)


def _round_up(x, m):
    return _cdiv(x, m) * m


def _vmem_budget_bytes():
    """Per-TensorCore VMEM Mosaic may use (physical capacity minus headroom)."""
    cap = 64 * _MIB                      # conservative default (v7x per-TC)
    try:
        info = pltpu.get_tpu_info()
        cap = int(getattr(info, "vmem_capacity_bytes", cap)) or cap
    except Exception:
        pass
    # Never hand the compiler the full physical VMEM: leave room for its own
    # scratch / semaphores / anything we under-counted.
    return max(32 * _MIB, min(cap - 16 * _MIB, int(cap * 0.8)))


def _split_rows(m, preferred_tile, want_two_blocks):
    """Row tile (multiple of _ROW_GRANULE) with minimal padding waste."""
    nb = max(1, _cdiv(m, max(int(preferred_tile), _ROW_GRANULE)))
    if want_two_blocks and nb == 1 and m >= 4 * _ROW_GRANULE:
        nb = 2                           # keep both v7x TensorCores busy
    tm = _round_up(_cdiv(m, nb), _ROW_GRANULE)
    return tm, tm * nb


def _split_hidden(h, preferred_tile):
    """Hidden tile (multiple of 128) with minimal padding (no tile collapse)."""
    h128 = _round_up(h, _LANE_GRANULE)
    pref = max(_LANE_GRANULE,
               (min(int(preferred_tile), h128) // _LANE_GRANULE) * _LANE_GRANULE)
    nb = _cdiv(h128, pref)
    th = _round_up(_cdiv(h128, nb), _LANE_GRANULE)
    return th, th * nb


# --------------------------------------------------------------------------
# Kernels
# --------------------------------------------------------------------------
def _fast_kernel(x_ref, w_ref, b_ref, o_ref, *, mm_dtype):
    # Resident-weight path: x block covers the full (padded) hidden dim, W is
    # whole and stays in VMEM across all row tiles (constant block index).
    x = x_ref[...]
    y = jnp.dot(x.astype(mm_dtype), w_ref[...],
                preferred_element_type=jnp.float32)
    y = y + b_ref[...]                                   # bias is f32
    silu = y * jax.nn.sigmoid(y)                         # f32 on VPU/EUP
    o_ref[...] = (x.astype(jnp.float32) + silu).astype(o_ref.dtype)


def _stream_kernel_f32out(x_ref, w_ref, xres_ref, b_ref, o_ref):
    # Output dtype is f32: accumulate directly into the resident output block
    # (out block index independent of k) -> no scratch, no extra RMW copy.
    k = pl.program_id(2)
    part = jnp.dot(x_ref[...], w_ref[...], preferred_element_type=jnp.float32)

    @pl.when(k == 0)
    def _init():
        o_ref[...] = part

    @pl.when(k > 0)
    def _acc():
        o_ref[...] += part

    @pl.when(k == pl.num_programs(2) - 1)
    def _finalize():
        y = o_ref[...] + b_ref[...]
        o_ref[...] = xres_ref[...] + y * jax.nn.sigmoid(y)


def _stream_kernel(x_ref, w_ref, xres_ref, b_ref, o_ref, acc_ref):
    # General streaming path (non-f32 output) with an f32 VMEM accumulator.
    k = pl.program_id(2)

    @pl.when(k == 0)
    def _init():
        acc_ref[...] = jnp.zeros_like(acc_ref)

    acc_ref[...] += jnp.dot(x_ref[...], w_ref[...],
                            preferred_element_type=jnp.float32)

    @pl.when(k == pl.num_programs(2) - 1)
    def _finalize():
        y = acc_ref[...] + b_ref[...]
        o_ref[...] = (xres_ref[...].astype(jnp.float32)
                      + y * jax.nn.sigmoid(y)).astype(o_ref.dtype)


# --------------------------------------------------------------------------
# Wrapper
# --------------------------------------------------------------------------
@functools.partial(jax.jit, static_argnames=(
    "block_m", "block_n", "block_k", "compute_dtype", "allow_resident"))
def resblock_forward(x, weight, bias, *, block_m=1024, block_n=1024,
                     block_k=1024, compute_dtype=jnp.bfloat16,
                     allow_resident=True):
    """ResBlock forward: x + SiLU(x @ weight.T + bias).

    x: (..., H); weight: (H, H) PyTorch nn.Linear layout (out, in); bias: (H,).
    compute_dtype: matmul-operand dtype (bf16 default = MXU-native on
    v5e/v6e/v7x).  Accumulation, bias, SiLU and the residual are always f32.
    """
    orig_shape = x.shape
    H = orig_shape[-1]
    x2d = x.reshape(-1, H)
    M = x2d.shape[0]
    out_dtype = x2d.dtype
    mm_dtype = jnp.dtype(compute_dtype) if compute_dtype is not None else jnp.dtype(out_dtype)

    x_it = jnp.dtype(out_dtype).itemsize
    mm_it = jnp.dtype(mm_dtype).itemsize
    budget = _vmem_budget_bytes()

    # One-time wrapper-side transforms (amortised over every row tile):
    # transpose W to (in, out) so the kernel does a plain NN matmul, cast it to
    # the matmul dtype, keep bias in f32.
    w_t = weight.T.astype(mm_dtype)
    b_f32 = bias.astype(jnp.float32)

    # ---------------- resident-weight fast path ----------------------------
    if allow_resident:
        H_pad = _round_up(H, _LANE_GRANULE)
        tm, M_pad = _split_rows(M, block_m, want_two_blocks=True)
        while True:
            est = (2 * H_pad * H_pad * mm_it       # W (assume double-buffered)
                   + 2 * tm * H_pad * x_it         # x tile (matmul + residual)
                   + 2 * tm * H_pad * x_it         # output tile
                   + tm * H_pad * (mm_it + 4)      # in-kernel cast + f32 y temps
                   + 2 * H_pad * 4)                # bias
            if est <= budget or tm <= _ROW_GRANULE:
                break
            tm = max(_ROW_GRANULE, _round_up(tm // 2, _ROW_GRANULE))
            M_pad = _round_up(M, tm)

        if est <= budget:
            x_p = x2d
            if (M_pad, H_pad) != (M, H):
                x_p = jnp.pad(x2d, ((0, M_pad - M), (0, H_pad - H)))
            w_p = w_t if H_pad == H else jnp.pad(w_t, ((0, H_pad - H), (0, H_pad - H)))
            b_p = (b_f32 if H_pad == H else jnp.pad(b_f32, (0, H_pad - H))).reshape(1, H_pad)

            out2d = pl.pallas_call(
                functools.partial(_fast_kernel, mm_dtype=mm_dtype),
                out_shape=jax.ShapeDtypeStruct((M_pad, H_pad), out_dtype),
                grid_spec=pltpu.PrefetchScalarGridSpec(
                    num_scalar_prefetch=0,
                    grid=(M_pad // tm,),
                    in_specs=[
                        pl.BlockSpec((tm, H_pad), lambda i: (i, 0)),     # x
                        pl.BlockSpec((H_pad, H_pad), lambda i: (0, 0)),  # W (resident)
                        pl.BlockSpec((1, H_pad), lambda i: (0, 0)),      # bias
                    ],
                    out_specs=pl.BlockSpec((tm, H_pad), lambda i: (i, 0)),
                ),
                compiler_params=pltpu.CompilerParams(
                    dimension_semantics=("parallel",),
                    vmem_limit_bytes=budget,
                ),
            )(x_p, w_p, b_p)
            return out2d[:M, :H].reshape(orig_shape)

    # ---------------- streaming (tiled K) fallback --------------------------
    th, H_pad = _split_hidden(H, min(block_n, block_k))
    tm, M_pad = _split_rows(M, block_m, want_two_blocks=(H_pad // th) < 2)
    use_direct = jnp.dtype(out_dtype) == jnp.float32

    def est_stream(tm_, th_):
        e = (2 * tm_ * th_ * mm_it       # x matmul tile (mm dtype)
             + 2 * th_ * th_ * mm_it     # weight tile
             + 2 * tm_ * th_ * x_it      # residual tile
             + 2 * tm_ * th_ * x_it      # output tile
             + 2 * th_ * 4)              # bias
        if not use_direct:
            e += tm_ * th_ * 4           # f32 accumulator scratch
        return e

    # Safety-net shrink (rare: 1024 tiles in bf16/f32 fit even the v7x budget).
    while est_stream(tm, th) > budget and (tm > 4 * _ROW_GRANULE or th > _LANE_GRANULE):
        if tm >= th and tm > 4 * _ROW_GRANULE:
            tm = max(4 * _ROW_GRANULE, _round_up(tm // 2, _ROW_GRANULE))
        else:
            th = max(_LANE_GRANULE, _round_up(th // 2, _LANE_GRANULE))
        M_pad = _round_up(M, tm)
        H_pad = _round_up(H, th)

    x_res = x2d
    if (M_pad, H_pad) != (M, H):
        x_res = jnp.pad(x2d, ((0, M_pad - M), (0, H_pad - H)))
    x_mm = x_res.astype(mm_dtype)        # wrapper-side cast of the matmul operand
    w_p = w_t if H_pad == H else jnp.pad(w_t, ((0, H_pad - H), (0, H_pad - H)))
    b_p = (b_f32 if H_pad == H else jnp.pad(b_f32, (0, H_pad - H))).reshape(1, H_pad)

    if use_direct:
        kernel = _stream_kernel_f32out
        scratch = []
    else:
        kernel = _stream_kernel
        scratch = [pltpu.VMEM((tm, th), jnp.float32)]

    # TODO(synk): if profiling on v6e shows exposed DMA at tile-row boundaries,
    # add pipeline_mode=pl.Buffered(3) to the x / W in_specs below.
    out2d = pl.pallas_call(
        kernel,
        out_shape=jax.ShapeDtypeStruct((M_pad, H_pad), out_dtype),
        grid_spec=pltpu.PrefetchScalarGridSpec(
            num_scalar_prefetch=0,
            grid=(M_pad // tm, H_pad // th, H_pad // th),
            in_specs=[
                pl.BlockSpec((tm, th), lambda i, j, k: (i, k)),   # x (matmul, mm dtype)
                pl.BlockSpec((th, th), lambda i, j, k: (k, j)),   # W^T tile (in, out)
                pl.BlockSpec((tm, th), lambda i, j, k: (i, j)),   # x (residual, orig dtype)
                pl.BlockSpec((1, th), lambda i, j, k: (0, j)),    # bias
            ],
            out_specs=pl.BlockSpec((tm, th), lambda i, j, k: (i, j)),
            scratch_shapes=scratch,
        ),
        compiler_params=pltpu.CompilerParams(
            dimension_semantics=("parallel", "parallel", "arbitrary"),
            vmem_limit_bytes=budget,
        ),
    )(x_mm, w_p, x_res, b_p)

    return out2d[:M, :H].reshape(orig_shape)


# --------------------------------------------------------------------------
# Reference + tests
# --------------------------------------------------------------------------
def _reference(x, weight, bias):
    xf = x.astype(jnp.float32)
    y = jnp.einsum("...h,oh->...o", xf, weight.astype(jnp.float32),
                   precision=lax.Precision.HIGHEST) + bias.astype(jnp.float32)
    return xf + y * jax.nn.sigmoid(y)


if __name__ == "__main__":
    key = jax.random.PRNGKey(0)
    k_x, k_b, k_x2, k_w2, k_b2 = jax.random.split(key, 5)

    # --- Test 1: module-faithful init (weight = zeros_), hidden=32 ----------
    hidden, batch, seq = 32, 2, 8
    x = jax.random.normal(k_x, (batch, seq, hidden), dtype=jnp.float32)
    weight = jnp.zeros((hidden, hidden), dtype=jnp.float32)   # torch.nn.init.zeros_
    bound = 1.0 / jnp.sqrt(hidden)
    bias = jax.random.uniform(k_b, (hidden,), jnp.float32, -bound, bound)

    out = jax.block_until_ready(resblock_forward(x, weight, bias))
    ref = _reference(x, weight, bias)
    assert out.shape == x.shape
    assert jnp.allclose(out, ref, atol=1e-5, rtol=1e-5), "mismatch (H=32, zero W)"

    # --- Test 2: nonzero weight, hidden=256 ----------------------------------
    hidden2, batch2, seq2 = 256, 2, 24
    x2 = jax.random.normal(k_x2, (batch2, seq2, hidden2), dtype=jnp.float32)
    weight2 = 0.02 * jax.random.normal(k_w2, (hidden2, hidden2), dtype=jnp.float32)
    bound2 = 1.0 / jnp.sqrt(hidden2)
    bias2 = jax.random.uniform(k_b2, (hidden2,), jnp.float32, -bound2, bound2)
    ref2 = _reference(x2, weight2, bias2)

    # (a) default bf16-MXU resident-weight fast path
    out2a = jax.block_until_ready(resblock_forward(x2, weight2, bias2))
    assert out2a.shape == x2.shape
    assert jnp.allclose(out2a, ref2, atol=2e-2, rtol=2e-2), "mismatch (bf16 fast path)"

    # (b) f32 matmul fast path (tight tolerance)
    out2b = jax.block_until_ready(
        resblock_forward(x2, weight2, bias2, compute_dtype=jnp.float32))
    assert jnp.allclose(out2b, ref2, atol=2e-3, rtol=2e-3), "mismatch (f32 fast path)"

    # (c) streaming (tiled-K) path, f32 output accumulated directly in o_ref
    out2c = jax.block_until_ready(
        resblock_forward(x2, weight2, bias2, allow_resident=False,
                         block_m=32, block_n=128, block_k=128))
    assert jnp.allclose(out2c, ref2, atol=2e-2, rtol=2e-2), "mismatch (stream f32-out)"

    # (d) streaming path with bf16 activations/output (acc-scratch kernel)
    x2b = x2.astype(jnp.bfloat16)
    out2d = jax.block_until_ready(
        resblock_forward(x2b, weight2, bias2, allow_resident=False,
                         block_m=32, block_n=128, block_k=128))
    ref2d = _reference(x2b, weight2, bias2)
    assert out2d.dtype == jnp.bfloat16
    assert jnp.allclose(out2d.astype(jnp.float32), ref2d,
                        atol=3e-2, rtol=3e-2), "mismatch (stream bf16-out)"

    print("KERNEL_OK")
</pallas_src>

<mosaic_0001>
module attributes {stable_mosaic.version = 11 : i64} {
  func.func @_fast_kernel(%arg0: i32, %arg1: memref<16x128xf32, #tpu.memory_space<vmem>>, %arg2: memref<128x128xbf16, #tpu.memory_space<vmem>>, %arg3: memref<1x128xf32, #tpu.memory_space<vmem>>, %arg4: memref<16x128xf32, #tpu.memory_space<vmem>>) attributes {dimension_semantics = [#tpu.dimension_semantics<parallel>], iteration_bounds = array<i64: 1>, scalar_prefetch = 0 : i64, scratch_operands = 0 : i64, tpu.core_type = #tpu.core_type<tc>, window_params = [{transform_indices = @transform_0, window_bounds = array<i64: 16, 128>}, {pipeline_mode = #tpu.pipeline_mode<synchronous>, transform_indices = @transform_1, window_bounds = array<i64: 128, 128>}, {pipeline_mode = #tpu.pipeline_mode<synchronous>, transform_indices = @transform_2, window_bounds = array<i64: 1, 128>}, {transform_indices = @transform_3, window_bounds = array<i64: 16, 128>}]} {
    %c0 = arith.constant 0 : index
    %c0_0 = arith.constant 0 : index
    %0 = vector.load %arg1[%c0, %c0_0] : memref<16x128xf32, #tpu.memory_space<vmem>>, vector<16x128xf32>
    %1 = arith.truncf %0 : vector<16x128xf32> to vector<16x128xbf16>
    %c0_1 = arith.constant 0 : index
    %c0_2 = arith.constant 0 : index
    %2 = vector.load %arg2[%c0_1, %c0_2] : memref<128x128xbf16, #tpu.memory_space<vmem>>, vector<128x128xbf16>
    %cst = arith.constant dense<0.000000e+00> : vector<16x128xf32>
    %3 = tpu.matmul %1, %2, %cst {dimension_numbers = #tpu.dot_dimension_numbers<[1], [0], [0], [1], [0, 0, 1, 1], [], []>} : vector<16x128xbf16>, vector<128x128xbf16>, vector<16x128xf32> -> vector<16x128xf32>
    %c0_3 = arith.constant 0 : index
    %c0_4 = arith.constant 0 : index
    %4 = vector.load %arg3[%c0_3, %c0_4] : memref<1x128xf32, #tpu.memory_space<vmem>>, vector<1x128xf32>
    %5 = vector.broadcast %4 : vector<1x128xf32> to vector<16x128xf32>
    %6 = arith.addf %3, %5 : vector<16x128xf32>
    %7 = arith.negf %6 : vector<16x128xf32>
    %8 = math.exp %7 : vector<16x128xf32>
    %cst_5 = arith.constant 1.000000e+00 : f32
    %9 = vector.broadcast %cst_5 : f32 to vector<16x128xf32>
    %10 = arith.addf %9, %8 : vector<16x128xf32>
    %11 = arith.divf %9, %10 : vector<16x128xf32>
    %12 = arith.mulf %6, %11 : vector<16x128xf32>
    %13 = arith.addf %0, %12 : vector<16x128xf32>
    %c0_6 = arith.constant 0 : index
    %c0_7 = arith.constant 0 : index
    %14 = vector.load %arg4[%c0_6, %c0_7] : memref<16x128xf32, #tpu.memory_space<vmem>>, vector<16x128xf32>
    tpu.vector_store %arg4[%c0_6, %c0_7], %13 {strides = array<i32>} : memref<16x128xf32, #tpu.memory_space<vmem>>, vector<16x128xf32>,
    return
  }
  func.func @transform_0(%arg0: i32) -> (i32, i32) {
    %c0_i32 = arith.constant 0 : i32
    %c0_i32_0 = arith.constant 0 : i32
    return %arg0, %c0_i32 : i32, i32
  }
  func.func @transform_1(%arg0: i32) -> (i32, i32) {
    %c0_i32 = arith.constant 0 : i32
    %c0_i32_0 = arith.constant 0 : i32
    %c0_i32_1 = arith.constant 0 : i32
    return %c0_i32, %c0_i32_0 : i32, i32
  }
  func.func @transform_2(%arg0: i32) -> (i32, i32) {
    %c0_i32 = arith.constant 0 : i32
    %c0_i32_0 = arith.constant 0 : i32
    %c0_i32_1 = arith.constant 0 : i32
    return %c0_i32, %c0_i32_0 : i32, i32
  }
  func.func @transform_3(%arg0: i32) -> (i32, i32) {
    %c0_i32 = arith.constant 0 : i32
    %c0_i32_0 = arith.constant 0 : i32
    return %arg0, %c0_i32 : i32, i32
  }
}

</mosaic_0001>

<bundles_post_ra>
// kernel: resblock_forward.1
= control target key start
LH: loop header
LB: loop body
LE: loop exit
PB: predicated region body
PF: predicated region fallthrough
CT: control target
= control target key end

     0   :  { %v210_v0 = vmov 0.0   ;;  %vm211_vm0 = vmmov 0   ;;  %s271_s1 = inlined_call_operand.vmem [shape: bf16[128,128], index: 1, kind: input, shape index: {}]   ;;  %s272_s0 = inlined_call_operand.vmem [shape: f32[16,128], index: 0, kind: input, shape index: {}]   ;;  %s273_s2 = inlined_call_operand.vmem [shape: f32[1,128], index: 2, kind: input, shape index: {}]   ;;  %s274_s3 = inlined_call_operand.vmem [shape: f32[16,128], index: 3, kind: output, shape index: {}]  }
   0x1   :  { %172 = vmatprep.subr.bf16.mxu0 %v210_v0  ;;  %v194_v1 = vld [vmem:[%s271_s1] sm:$0xff]   ;;  %188 = vmatprep.mubr.msk.bf16.mxu0 %vm211_vm0, %v210_v0  ;;  %v195_v2 = vld [vmem:[%s271_s1 + $0x8] sm:$0xff]   ;;  %v196_v3 = vld [vmem:[%s271_s1 + $0x10] sm:$0xff]  }
   0x2   :  { %173 = vmatpush3.bf16.msra.mxu0 %v194_v1  ;;  %v197_v4 = vld [vmem:[%s271_s1 + $0x18] sm:$0xff]   ;;  %v198_v5 = vld [vmem:[%s271_s1 + $0x20] sm:$0xff]   ;;  %v199_v6 = vld [vmem:[%s271_s1 + $0x28] sm:$0xff]  }
   0x3   :  { %174 = vmatprep.subr.bf16.mxu0 %v210_v0  ;;  %v200_v7 = vld [vmem:[%s271_s1 + $0x30] sm:$0xff]   ;;  %v201_v8 = vld [vmem:[%s271_s1 + $0x38] sm:$0xff]   ;;  %v15_v9 = vld [vmem:[%s272_s0] sm:$0xff] }
   0x4   :  { %v16_v10 = vld [vmem:[%s272_s0 + $0x8] sm:$0xff]  ;;  %v152_v12 = vld [vmem:[%s273_s2] ss:$0 sm:$0xff] }
   0x5   :  { %v17_v11 = vpack.c.bf16 %v16_v10, %v15_v9 }
   0x6   :  { %175 = vmatpush3.bf16.msra.mxu0 %v195_v2 }
   0x7   :  { %176 = vmatprep.subr.bf16.mxu0 %v210_v0 }
   0xa   :  { %177 = vmatpush3.bf16.msra.mxu0 %v196_v3 }
   0xb   :  { %178 = vmatprep.subr.bf16.mxu0 %v210_v0 }
   0xe   :  { %179 = vmatpush3.bf16.msra.mxu0 %v197_v4 }
   0xf   :  { %180 = vmatprep.subr.bf16.mxu0 %v210_v0 }
  0x12   :  { %181 = vmatpush3.bf16.msra.mxu0 %v198_v5 }
  0x13   :  { %182 = vmatprep.subr.bf16.mxu0 %v210_v0 }
  0x16   :  { %183 = vmatpush3.bf16.msra.mxu0 %v199_v6 }
  0x17   :  { %184 = vmatprep.subr.bf16.mxu0 %v210_v0 }
  0x1a   :  { %185 = vmatpush3.bf16.msra.mxu0 %v200_v7 }
  0x1b   :  { %186 = vmatprep.subr.bf16.mxu0 %v210_v0 }
  0x1e   :  { %187 = vmatpush3.bf16.msra.mxu0 %v201_v8 }
  0x21   :  { %189 = vmatmul.mubr.bf16.vlgmr.msra.gmra.mrb[0].mxu0 %v17_v11 }
  0xf4   :  { %v123_v13 = vpop.f32.mrb[0].mxu0 }
  0xf5   :  { %v124_v14 = vadd.f32 %v152_v12, %v123_v13  ;;  %v190_v15 = vpop.f32.mrb[1].mxu0 }
  0xf6   :  { %v126_v16 = vpop.f32.mrb[2].mxu0 }
  0xf7   :  { %v161_v17 = vmul.f32 -1.442695, %v124_v14  ;;  %v127_v18 = vadd.f32 %v152_v12, %v126_v16  ;;  %v191_v19 = vpop.f32.mrb[3].mxu0 }
  0xf9   :  { %202 = vpow2.f32 %v161_v17  ;;  %v162_v20 = vmul.f32 -1.442695, %v127_v18 }
  0xfb   :  { %204 = vpow2.f32 %v162_v20 }
 0x103   :  { %v203_v21 = vpop.eup %202 }
 0x104   :  { %v136_v22 = vadd.f32 1.0, %v203_v21 }
 0x105   :  { %v205_v23 = vpop.eup %204 }
 0x106   :  { %206 = vrcp.f32 %v136_v22  ;;  %v137_v24 = vadd.f32 1.0, %v205_v23 }
 0x108   :  { %208 = vrcp.f32 %v137_v24 }
 0x110   :  { %v207_v25 = vpop.eup %206 }
 0x111   :  { %v142_v26 = vmul.f32 %v207_v25, %v124_v14 }
 0x112   :  { %v209_v27 = vpop.eup %208 }
 0x113   :  { %v144_v28 = vadd.f32 %v142_v26, %v15_v9  ;;  %v143_v29 = vmul.f32 %v209_v27, %v127_v18 }
 0x115   :  { %146 = vst [vmem:[%s274_s3] sm:$0xff] %v144_v28  ;;  %v145_v30 = vadd.f32 %v143_v29, %v16_v10 }
 0x117   :  { %147 = vst [vmem:[%s274_s3 + $0x8] sm:$0xff] %v145_v30 }

</bundles_post_ra>
